<compile_context>
chip_gen: v7x
topology: tpu7x:2x2x1
jax: 0.10.0
libtpu: 0.0.40
codegen_flags: <defaults>
</compile_context>

<pallas_src>
import functools

import jax
import jax.numpy as jnp
from jax.experimental import pallas as pl
from jax.experimental.pallas import tpu as pltpu

TILE_BT = 2048  # rows per grid step; multiple of 128 (lane-dense index blocks).
_NEG_BIG = -1e30  # finite vocab-pad fill (NOT -inf: 0 * inf would NaN the matmul)


def _round_up(x, m):
    return (x + m - 1) // m * m


def _onehot_idx_t(idx_row, v_pad, tile_bt):
    """(v_pad, tile_bt) bf16 one-hot: onehot[c, r] = (idx[r] == c)."""
    vrow = jax.lax.broadcasted_iota(jnp.int32, (v_pad, tile_bt), 1 - 1)  # sublane iota
    return vrow, (vrow == idx_row).astype(jnp.bfloat16)


def _row_losses(vrow, onehot_idx_t, tgt_row, emb, tile_start, num_valid_rows):
    """Per-row cross-entropy, computed entirely in the lane-dense orientation.

    Returns (1, tile_bt) f32 with padded rows zeroed.
    """
    tile_bt = onehot_idx_t.shape[1]
    # logits_t[v, r] = table[idx[r], v]  (trans-A matmul; vocab on sublanes).
    logits_t = jax.lax.dot_general(
        emb, onehot_idx_t, (((0,), (0,)), ((), ())),
        preferred_element_type=jnp.float32)                        # (v_pad, tile_bt)
    # Padded vocab rows carry the baked -1e30 -> exp underflows to 0 below.
    m = jnp.max(logits_t, axis=0, keepdims=True)                   # (1, tile_bt)
    lse = jnp.log(jnp.sum(jnp.exp(logits_t - m), axis=0, keepdims=True)) + m
    picked = jnp.sum(jnp.where(vrow == tgt_row, logits_t, 0.0),
                     axis=0, keepdims=True)                        # (1, tile_bt)
    lane = jax.lax.broadcasted_iota(jnp.int32, (1, tile_bt), 1) + tile_start
    return jnp.where(lane < num_valid_rows, lse - picked, 0.0)


def _bigram_logits_kernel(idx_ref, emb_ref, logits_ref):
    v_pad = emb_ref.shape[0]
    tile_bt = idx_ref.shape[1]
    idx = idx_ref[...]                                             # (1, tile_bt)
    _, onehot_t = _onehot_idx_t(idx, v_pad, tile_bt)
    # logits[r, v] = table[idx[r], v]
    logits = jax.lax.dot_general(
        onehot_t, emb_ref[...], (((0,), (0,)), ((), ())),
        preferred_element_type=jnp.float32)                        # (tile_bt, v_pad)
    logits_ref[...] = logits.astype(logits_ref.dtype)              # bf16, lossless


def _bigram_loss_logits_kernel(idx_ref, tgt_ref, emb_ref, logits_ref, rowloss_ref,
                               *, num_valid_rows):
    i = pl.program_id(0)
    v_pad = emb_ref.shape[0]
    tile_bt = idx_ref.shape[1]
    idx = idx_ref[...]                                             # (1, tile_bt)
    tgt = tgt_ref[...]                                             # (1, tile_bt)
    emb = emb_ref[...]                                             # (v_pad, v_pad) bf16
    vrow, onehot_t = _onehot_idx_t(idx, v_pad, tile_bt)

    # Logits writeback in (tile_bt, v_pad) row-major orientation, bf16.
    logits = jax.lax.dot_general(
        onehot_t, emb, (((0,), (0,)), ((), ())),
        preferred_element_type=jnp.float32)
    logits_ref[...] = logits.astype(logits_ref.dtype)

    # Per-row losses, lane-dense (1, tile_bt); masked for padded BT rows.
    rowloss_ref[...] = _row_losses(vrow, onehot_t, tgt, emb,
                                   i * tile_bt, num_valid_rows)


def _bigram_loss_only_kernel(idx_ref, tgt_ref, emb_ref, rowloss_ref,
                             *, num_valid_rows):
    i = pl.program_id(0)
    v_pad = emb_ref.shape[0]
    tile_bt = idx_ref.shape[1]
    idx = idx_ref[...]
    tgt = tgt_ref[...]
    emb = emb_ref[...]
    vrow, onehot_t = _onehot_idx_t(idx, v_pad, tile_bt)
    rowloss_ref[...] = _row_losses(vrow, onehot_t, tgt, emb,
                                   i * tile_bt, num_valid_rows)


def bigram_forward(idx, emb_table, targets=None, *, return_logits=True, unpad=True):
    """Pallas equivalent of BigramLanguageModel.forward.

    idx:       (B, T) int token ids
    emb_table: (V, V) float32 embedding table
    targets:   optional (B, T) int token ids

    Returns (logits, loss):
      - targets is None  -> logits (B, T, V) [bf16], loss None
      - targets given    -> logits (B*T, V) [bf16], loss scalar f32
      - return_logits=False (with targets) -> (None, loss) and no logits
        HBM writeback at all (fast training-loss path).
      - unpad=False returns the padded (BT_pad, V_pad) logits slab (padded
        vocab columns hold -1e30, padded rows hold table row 0), avoiding the
        wrapper-side re-slice copy.
    """
    B, T = idx.shape
    V = emb_table.shape[0]
    BT = B * T

    # Lane-dense vocab padding; BT tiled along the lane axis of the index rows.
    V_pad = _round_up(V, 128)
    tile_bt = min(TILE_BT, _round_up(BT, 128))
    BT_pad = _round_up(BT, tile_bt)
    num_tiles = BT_pad // tile_bt

    idx2 = jnp.pad(idx.reshape(-1).astype(jnp.int32),
                   (0, BT_pad - BT)).reshape(1, BT_pad)            # lane-dense

    # Padded table: pad rows/cols, bake the vocab-column mask (finite -1e30),
    # then cast to bf16 (one-hot selection is exact in bf16).
    emb_p = jnp.pad(emb_table.astype(jnp.float32),
                    ((0, V_pad - V), (0, V_pad - V)))
    if V_pad != V:
        emb_p = emb_p.at[:, V:].set(_NEG_BIG)
    emb_p = emb_p.astype(jnp.bfloat16)

    idx_spec = pl.BlockSpec((1, tile_bt), lambda i: (0, i))        # lane-dense indices
    emb_spec = pl.BlockSpec((V_pad, V_pad), lambda i: (0, 0))      # VMEM-resident table
    logits_spec = pl.BlockSpec((tile_bt, V_pad), lambda i: (i, 0))
    rowloss_spec = pl.BlockSpec((1, tile_bt), lambda i: (0, i))    # lane-dense losses

    compiler_params = pltpu.CompilerParams(
        dimension_semantics=("parallel",),          # no carried state -> megacore OK
        vmem_limit_bytes=32 * 1024 * 1024)

    if targets is None:
        logits_p = pl.pallas_call(
            _bigram_logits_kernel,
            grid=(num_tiles,),
            out_shape=jax.ShapeDtypeStruct((BT_pad, V_pad), jnp.bfloat16),
            in_specs=[idx_spec, emb_spec],
            out_specs=logits_spec,
            compiler_params=compiler_params,
        )(idx2, emb_p)
        if not unpad:
            return logits_p, None
        return logits_p[:BT, :V].reshape(B, T, V), None

    tgt2 = jnp.pad(targets.reshape(-1).astype(jnp.int32),
                   (0, BT_pad - BT)).reshape(1, BT_pad)

    if not return_logits:
        kernel = functools.partial(_bigram_loss_only_kernel, num_valid_rows=BT)
        rowloss = pl.pallas_call(
            kernel,
            grid=(num_tiles,),
            out_shape=jax.ShapeDtypeStruct((1, BT_pad), jnp.float32),
            in_specs=[idx_spec, idx_spec, emb_spec],
            out_specs=rowloss_spec,
            compiler_params=compiler_params,
        )(idx2, tgt2, emb_p)
        return None, jnp.sum(rowloss) / jnp.float32(BT)

    kernel = functools.partial(_bigram_loss_logits_kernel, num_valid_rows=BT)
    logits_p, rowloss = pl.pallas_call(
        kernel,
        grid=(num_tiles,),
        out_shape=(
            jax.ShapeDtypeStruct((BT_pad, V_pad), jnp.bfloat16),
            jax.ShapeDtypeStruct((1, BT_pad), jnp.float32),
        ),
        in_specs=[idx_spec, idx_spec, emb_spec],
        out_specs=(logits_spec, rowloss_spec),
        compiler_params=compiler_params,
    )(idx2, tgt2, emb_p)
    loss = jnp.sum(rowloss) / jnp.float32(BT)
    logits_out = logits_p if not unpad else logits_p[:BT, :V]
    return logits_out, loss


# TODO(synk): generate() (autoregressive torch.multinomial sampling loop) is a
#             host-side loop; not implemented as a Pallas kernel.


def _reference_forward(idx, emb_table, targets):
    # Pure-JAX reference of the PyTorch semantics.
    logits = emb_table[idx]                       # (B, T, V)
    B, T, V = logits.shape
    logits2 = logits.reshape(B * T, V)
    tgt = targets.reshape(-1)
    lse = jax.nn.logsumexp(logits2, axis=-1)
    picked = jnp.take_along_axis(logits2, tgt[:, None], axis=-1)[:, 0]
    loss = jnp.mean(lse - picked)
    return logits2, loss


if __name__ == "__main__":
    # Small synthetic setup: vocab of 65 chars (tiny-shakespeare-like),
    # batch=2, seq=8.
    vocab_size = 65
    B, T = 2, 8

    key = jax.random.PRNGKey(0)
    k_emb, k_idx, k_tgt, k_idx2, k_tgt2 = jax.random.split(key, 5)

    # nn.Embedding default init is N(0, 1).
    emb_table = jax.random.normal(k_emb, (vocab_size, vocab_size), dtype=jnp.float32)
    idx = jax.random.randint(k_idx, (B, T), 0, vocab_size, dtype=jnp.int32)
    targets = jax.random.randint(k_tgt, (B, T), 0, vocab_size, dtype=jnp.int32)

    # Forward with targets (logits + cross-entropy loss).
    logits, loss = bigram_forward(idx, emb_table, targets)
    jax.block_until_ready((logits, loss))

    # Loss-only fast path (no logits writeback).
    _, loss_only = bigram_forward(idx, emb_table, targets, return_logits=False)
    jax.block_until_ready(loss_only)

    # Forward without targets (inference path).
    logits_no_tgt, loss_none = bigram_forward(idx, emb_table, None)
    jax.block_until_ready(logits_no_tgt)
    assert loss_none is None
    assert logits_no_tgt.shape == (B, T, vocab_size)

    # References: the kernel gathers bf16-rounded table rows (one-hot select is
    # exact in bf16, f32 accumulate, bf16 store is lossless), so it matches the
    # bf16-rounded reference tightly and the f32 reference within bf16 error.
    emb_bf = emb_table.astype(jnp.bfloat16).astype(jnp.float32)
    ref_logits_bf, ref_loss_bf = _reference_forward(idx, emb_bf, targets)
    ref_logits_f32, ref_loss_f32 = _reference_forward(idx, emb_table, targets)

    assert logits.shape == (B * T, vocab_size)
    assert jnp.allclose(logits.astype(jnp.float32), ref_logits_bf, atol=1e-5, rtol=1e-5)
    assert jnp.allclose(loss, ref_loss_bf, atol=1e-4, rtol=1e-5)
    assert jnp.allclose(loss_only, loss, atol=1e-6, rtol=1e-6)
    assert jnp.allclose(logits.astype(jnp.float32), ref_logits_f32, atol=2e-2, rtol=2e-2)
    assert jnp.allclose(loss, ref_loss_f32, atol=2e-2, rtol=2e-2)
    assert jnp.allclose(logits_no_tgt.reshape(B * T, vocab_size).astype(jnp.float32),
                        ref_logits_bf, atol=1e-5, rtol=1e-5)

    # Larger shape to exercise the multi-tile grid, lane-dense index blocking,
    # row masking, and the per-tile partial-loss path (BT=2455 -> 2 tiles of
    # 2048 with padded rows in the last tile).
    B2, T2 = 5, 491
    idx_big = jax.random.randint(k_idx2, (B2, T2), 0, vocab_size, dtype=jnp.int32)
    tgt_big = jax.random.randint(k_tgt2, (B2, T2), 0, vocab_size, dtype=jnp.int32)
    logits_big, loss_big = bigram_forward(idx_big, emb_table, tgt_big)
    jax.block_until_ready((logits_big, loss_big))
    ref_logits_big, ref_loss_big = _reference_forward(idx_big, emb_bf, tgt_big)
    assert logits_big.shape == (B2 * T2, vocab_size)
    assert jnp.allclose(logits_big.astype(jnp.float32), ref_logits_big,
                        atol=1e-5, rtol=1e-5)
    assert jnp.allclose(loss_big, ref_loss_big, atol=1e-4, rtol=1e-5)

    _, loss_big_only = bigram_forward(idx_big, emb_table, tgt_big, return_logits=False)
    jax.block_until_ready(loss_big_only)
    assert jnp.allclose(loss_big_only, loss_big, atol=1e-6, rtol=1e-6)

    print("KERNEL_OK")
</pallas_src>

<mosaic_0001>
module attributes {stable_mosaic.version = 11 : i64} {
  func.func @_bigram_loss_logits_kernel(%arg0: i32, %arg1: memref<1x128xi32, #tpu.memory_space<vmem>>, %arg2: memref<1x128xi32, #tpu.memory_space<vmem>>, %arg3: memref<128x128xbf16, #tpu.memory_space<vmem>>, %arg4: memref<128x128xbf16, #tpu.memory_space<vmem>>, %arg5: memref<1x128xf32, #tpu.memory_space<vmem>>) attributes {dimension_semantics = [#tpu.dimension_semantics<parallel>], iteration_bounds = array<i64: 1>, scalar_prefetch = 0 : i64, scratch_operands = 0 : i64, tpu.core_type = #tpu.core_type<tc>, window_params = [{transform_indices = @transform_0, window_bounds = array<i64: 1, 128>}, {transform_indices = @transform_1, window_bounds = array<i64: 1, 128>}, {pipeline_mode = #tpu.pipeline_mode<synchronous>, transform_indices = @transform_2, window_bounds = array<i64: 128, 128>}, {transform_indices = @transform_3, window_bounds = array<i64: 128, 128>}, {transform_indices = @transform_4, window_bounds = array<i64: 1, 128>}]} {
    %c0 = arith.constant 0 : index
    %c0_0 = arith.constant 0 : index
    %0 = vector.load %arg1[%c0, %c0_0] : memref<1x128xi32, #tpu.memory_space<vmem>>, vector<1x128xi32>
    %c0_1 = arith.constant 0 : index
    %c0_2 = arith.constant 0 : index
    %1 = vector.load %arg2[%c0_1, %c0_2] : memref<1x128xi32, #tpu.memory_space<vmem>>, vector<1x128xi32>
    %c0_3 = arith.constant 0 : index
    %c0_4 = arith.constant 0 : index
    %2 = vector.load %arg3[%c0_3, %c0_4] : memref<128x128xbf16, #tpu.memory_space<vmem>>, vector<128x128xbf16>
    %3 = tpu.iota {dimensions = array<i32: 0>} : vector<128x128xi32>
    %4 = vector.broadcast %0 : vector<1x128xi32> to vector<128x128xi32>
    %5 = arith.cmpi eq, %3, %4 : vector<128x128xi32>
    %6 = arith.extui %5 : vector<128x128xi1> to vector<128x128xi32>
    %7 = arith.sitofp %6 : vector<128x128xi32> to vector<128x128xf32>
    %8 = arith.truncf %7 : vector<128x128xf32> to vector<128x128xbf16>
    %cst = arith.constant dense<0.000000e+00> : vector<128x128xf32>
    %9 = tpu.matmul %8, %2, %cst {dimension_numbers = #tpu.dot_dimension_numbers<[0], [0], [1], [1], [0, 1, 1, 1], [], []>} : vector<128x128xbf16>, vector<128x128xbf16>, vector<128x128xf32> -> vector<128x128xf32>
    %10 = arith.truncf %9 : vector<128x128xf32> to vector<128x128xbf16>
    %c0_5 = arith.constant 0 : index
    %c0_6 = arith.constant 0 : index
    %11 = vector.load %arg4[%c0_5, %c0_6] : memref<128x128xbf16, #tpu.memory_space<vmem>>, vector<128x128xbf16>
    tpu.vector_store %arg4[%c0_5, %c0_6], %10 {strides = array<i32>} : memref<128x128xbf16, #tpu.memory_space<vmem>>, vector<128x128xbf16>,
    %c128_i32 = arith.constant 128 : i32
    %12 = arith.muli %arg0, %c128_i32 : i32
    %cst_7 = arith.constant dense<0.000000e+00> : vector<128x128xf32>
    %13 = tpu.matmul %2, %8, %cst_7 {dimension_numbers = #tpu.dot_dimension_numbers<[0], [0], [1], [1], [0, 1, 1, 1], [], []>} : vector<128x128xbf16>, vector<128x128xbf16>, vector<128x128xf32> -> vector<128x128xf32>
    %cst_8 = arith.constant dense<0xFF800000> : vector<128xf32>
    %14 = vector.multi_reduction <maximumf>, %13, %cst_8 [0] : vector<128x128xf32> to vector<128xf32>
    %15 = vector.shape_cast %14 : vector<128xf32> to vector<1x128xf32>
    %16 = vector.broadcast %15 : vector<1x128xf32> to vector<128x128xf32>
    %17 = arith.subf %13, %16 : vector<128x128xf32>
    %18 = math.exp %17 : vector<128x128xf32>
    %cst_9 = arith.constant dense<0.000000e+00> : vector<128xf32>
    %19 = vector.multi_reduction <add>, %18, %cst_9 [0] : vector<128x128xf32> to vector<128xf32>
    %20 = vector.shape_cast %19 : vector<128xf32> to vector<1x128xf32>
    %21 = math.log %20 : vector<1x128xf32>
    %22 = arith.addf %21, %15 : vector<1x128xf32>
    %23 = vector.broadcast %1 : vector<1x128xi32> to vector<128x128xi32>
    %24 = arith.cmpi eq, %3, %23 : vector<128x128xi32>
    %cst_10 = arith.constant 0.000000e+00 : f32
    %25 = vector.broadcast %cst_10 : f32 to vector<128x128xf32>
    %26 = arith.select %24, %13, %25 : vector<128x128xi1>, vector<128x128xf32>
    %cst_11 = arith.constant dense<0.000000e+00> : vector<128xf32>
    %27 = vector.multi_reduction <add>, %26, %cst_11 [0] : vector<128x128xf32> to vector<128xf32>
    %28 = vector.shape_cast %27 : vector<128xf32> to vector<1x128xf32>
    %29 = tpu.iota {dimensions = array<i32: 1>} : vector<1x128xi32>
    %30 = vector.broadcast %12 : i32 to vector<1x128xi32>
    %31 = arith.addi %29, %30 : vector<1x128xi32>
    %c16_i32 = arith.constant 16 : i32
    %32 = vector.broadcast %c16_i32 : i32 to vector<1x128xi32>
    %33 = arith.cmpi slt, %31, %32 : vector<1x128xi32>
    %34 = arith.subf %22, %28 : vector<1x128xf32>
    %cst_12 = arith.constant 0.000000e+00 : f32
    %35 = vector.broadcast %cst_12 : f32 to vector<1x128xf32>
    %36 = arith.select %33, %34, %35 : vector<1x128xi1>, vector<1x128xf32>
    %c0_13 = arith.constant 0 : index
    %c0_14 = arith.constant 0 : index
    %37 = vector.load %arg5[%c0_13, %c0_14] : memref<1x128xf32, #tpu.memory_space<vmem>>, vector<1x128xf32>
    tpu.vector_store %arg5[%c0_13, %c0_14], %36 {strides = array<i32>} : memref<1x128xf32, #tpu.memory_space<vmem>>, vector<1x128xf32>,
    return
  }
  func.func @transform_0(%arg0: i32) -> (i32, i32) {
    %c0_i32 = arith.constant 0 : i32
    %c0_i32_0 = arith.constant 0 : i32
    return %c0_i32, %arg0 : i32, i32
  }
  func.func @transform_1(%arg0: i32) -> (i32, i32) {
    %c0_i32 = arith.constant 0 : i32
    %c0_i32_0 = arith.constant 0 : i32
    return %c0_i32, %arg0 : i32, i32
  }
  func.func @transform_2(%arg0: i32) -> (i32, i32) {
    %c0_i32 = arith.constant 0 : i32
    %c0_i32_0 = arith.constant 0 : i32
    %c0_i32_1 = arith.constant 0 : i32
    return %c0_i32, %c0_i32_0 : i32, i32
  }
  func.func @transform_3(%arg0: i32) -> (i32, i32) {
    %c0_i32 = arith.constant 0 : i32
    %c0_i32_0 = arith.constant 0 : i32
    return %arg0, %c0_i32 : i32, i32
  }
  func.func @transform_4(%arg0: i32) -> (i32, i32) {
    %c0_i32 = arith.constant 0 : i32
    %c0_i32_0 = arith.constant 0 : i32
    return %c0_i32, %arg0 : i32, i32
  }
}

</mosaic_0001>

<bundles_post_ra>
// kernel: tpu_custom_call.1
= control target key start
LH: loop header
LB: loop body
LE: loop exit
PB: predicated region body
PF: predicated region fallthrough
CT: control target
= control target key end

     0   :  { %10 = vsyncpa [#allocation3], 0  ;;  %s1497_s0 = inlined_call_operand.hbm [shape: s32[1,128], index: 0, kind: input, shape index: {}]   ;;  %s1498_s1 = inlined_call_operand.vmem [shape: s32[1,128], index: 1, kind: input, shape index: {}]   ;;  %s1499_s2 = inlined_call_operand.hbm [shape: bf16[128,128], index: 2, kind: input, shape index: {}]   ;;  %s1500_s3 = inlined_call_operand.hbm [shape: bf16[128,128], index: 3, kind: output, shape index: {0}]   ;;  %s1501_s4 = inlined_call_operand.hbm [shape: f32[1,128], index: 4, kind: output, shape index: {1}]  }
   0x1   :  { %11 = vsyncpa [#allocation6], 0 }
   0x2   :  { %12 = vsyncpa [#allocation4], 0 }
   0x3   :  { %13 = vsyncpa [#allocation9], 0  ;;  %s1048_s15 = smov [#allocation2]   ;;  %s1049_s17 = smov [#allocation5]  }
   0x4   :  { %s20_s16 = sshll.u32 %s1048_s15, 4  ;;  %s31_s18 = sshll.u32 %s1049_s17, 4  ;;  %s21_s16 = int_to_ptr.vmem [resolvable:$true] %s20_s16  ;;  %s1081_s18 = int_to_ptr.vmem [resolvable:$true] %s31_s18 }
   0x5   :  { %s952_s21 = scalar_lea.hbm %s1497_s0, 16 }
   0x6   :  { %p953_p0 = scmp.ne.s32.totalorder %s1497_s0, %s952_s21  ;;  %p956_p1 = scmp.lt.u32.totalorder %s952_s21, %s1497_s0 }
   0x8   :  { %p958_p2 = pnand %p956_p1, %p953_p0 }
   0xa   :  { %961 = shalt.err (!%p958_p2)
}
   0xb   :  { %s962_s26 = scalar_lea.vmem %s21_s16, 16  ;;  %s966_s27 = scalar_lea.vmem %s21_s16, 32 }
   0xc   :  { %p963_p3 = scmp.ne.s32.totalorder %s21_s16, %s962_s26  ;;  %p967_p4 = scmp.lt.s32.totalorder %s21_s16, %s21_s16 }
   0xd   :  { %p968_p5 = scmp.lt.s32.totalorder %s966_s27, %s962_s26 }
   0xf   :  { %p969_p6 = por %p968_p5, %p967_p4 }
  0x11   :  { %p970_p7 = pnand %p969_p6, %p963_p3 }
  0x13   :  { %973 = shalt.err (!%p970_p7)
}
  0x14   :  { %23 = dma.hbm_to_vmem [thread:$0]  %s1497_s0, 16, %s21_s16, [#allocation3]  }
  0x15   :  { %s974_s6 = scalar_lea.hbm %s1499_s2, 1024 }
  0x16   :  { %p975_p8 = scmp.ne.s32.totalorder %s1499_s2, %s974_s6  ;;  %p978_p9 = scmp.lt.u32.totalorder %s974_s6, %s1499_s2 }
  0x18   :  { %p980_p10 = pnand %p978_p9, %p975_p8 }
  0x1a   :  { %983 = shalt.err (!%p980_p10)
}
  0x1b   :  { %s984_s11 = scalar_lea.vmem %s1081_s18, 1024  ;;  %p989_p12 = scmp.lt.s32.totalorder %s1081_s18, %s1081_s18 }
  0x1c   :  { %p985_p11 = scmp.ne.s32.totalorder %s1081_s18, %s984_s11  ;;  %p990_p13 = scmp.lt.s32.totalorder %s984_s11, %s984_s11 }
  0x1e   :  { %p991_p0 = por %p990_p13, %p989_p12 }
  0x20   :  { %p992_p1 = pnand %p991_p0, %p985_p11 }
  0x22   :  { %995 = shalt.err (!%p992_p1)
}
  0x23   :  { %s1050_s0 = smov 64   ;;  %s1051_s12 = smov 4  }
  0x24   :  { %37 = dma.hbm_to_vmem [thread:$0]  %s1499_s2, 1024, %s1081_s18, [#allocation6], %s1050_s0, %s1050_s0, %s1051_s12  }
  0x25   :  { %1040 = dma.done.wait [#allocation3], 16  }
  0x26   :  { %1041 = vsyncadd [#allocation3], 4294967280 }
  0x27   :  { %1042 = dma.done.wait [#allocation6], 1024  }
  0x28   :  { %1043 = vsyncadd [#allocation6], 4294966272  ;;  %v63_v0 = vlaneseq  ;;  %v910_v1 = vld [vmem:[#allocation5] sm:$0xff]   ;;  %v911_v3 = vld [vmem:[#allocation5 + $0x8] sm:$0xff]   ;;  %v1052_v14 = vmov 1.0|1.0  }
  0x29   :  { %382 = vxpose.xlu0.c.b16.start [1/8] %v910_v1, 128  ;;  %838 = vmatprep.subr.bf16.mxu0 %v910_v1  ;;  %v912_v7 = vld [vmem:[#allocation5 + $0x10] sm:$0xff]   ;;  %v1133_v10 = vld [vmem:[#allocation2] ss:$0 sm:$0xff]  ;;  %v1053_v16 = vmov 0.0   ;;  %v914_v22 = vld [vmem:[#allocation5 + $0x20] sm:$0xff]  }
  0x2a   :  { %v1116_v2 = vshrl.u32 %v63_v0, 7  ;;  %839 = vmatpush3.bf16.msra.mxu0 %v910_v1  ;;  %v913_v11 = vld [vmem:[#allocation5 + $0x18] sm:$0xff]   ;;  %v915_v29 = vld [vmem:[#allocation5 + $0x28] sm:$0xff]   ;;  %v916_v36 = vld [vmem:[#allocation5 + $0x30] sm:$0xff]  }
  0x2b   :  { %840 = vmatprep.subr.bf16.mxu0 %v911_v3  ;;  %v917_v43 = vld [vmem:[#allocation5 + $0x38] sm:$0xff]  }
  0x2c   :  { %v1119_v4 = vadd.s32 8, %v1116_v2  ;;  %v1122_v5 = vadd.s32 16, %v1116_v2  ;;  %v1125_v6 = vadd.s32 24, %v1116_v2  ;;  %v1128_v8 = vadd.s32 32, %v1116_v2 }
  0x2d   :  { %383 = vxpose.xlu0.c.b16.cont [2/8] %v911_v3, 128  ;;  %v1131_v9 = vadd.s32 40, %v1116_v2  ;;  %vm84_vm0 = vcmp.eq.s32.totalorder %v1116_v2, %v1133_v10  ;;  %v1144_v12 = vadd.s32 48, %v1116_v2  ;;  %v1147_v13 = vadd.s32 56, %v1116_v2 }
  0x2e   :  { %841 = vmatpush3.bf16.msra.mxu0 %v911_v3  ;;  %vm85_vm1 = vcmp.eq.s32.totalorder %v1119_v4, %v1133_v10  ;;  %vm86_vm2 = vcmp.eq.s32.totalorder %v1122_v5, %v1133_v10  ;;  %vm87_vm3 = vcmp.eq.s32.totalorder %v1125_v6, %v1133_v10  ;;  %vm88_vm6 = vcmp.eq.s32.totalorder %v1128_v8, %v1133_v10 }
  0x2f   :  { %842 = vmatprep.subr.bf16.mxu0 %v912_v7  ;;  %vm726_vm4 = vmpackc.low %vm85_vm1, %vm84_vm0  ;;  %vm89_vm7 = vcmp.eq.s32.totalorder %v1131_v9, %v1133_v10  ;;  %v686_v17 = vsel %vm84_vm0, 1.0, %v1053_v16  ;;  %v687_v18 = vsel %vm85_vm1, 1.0, %v1053_v16  ;;  %v688_v20 = vsel %vm86_vm2, 1.0, %v1053_v16 }
  0x30   :  { %870 = vmatprep.subr.msk.bf16.mxu1 %vm726_vm4, %v1052_v14  ;;  %vm1156_vm5 = vmpackc.low %vm87_vm3, %vm86_vm2  ;;  %v132_v19 = vpack.c.bf16 %v687_v18, %v686_v17  ;;  %v689_v21 = vsel %vm87_vm3, 1.0, %v1053_v16  ;;  %v1189_v24 = vadd.s32 64, %v1116_v2  ;;  %v1192_v25 = vadd.s32 72, %v1116_v2  ;;  %v1332_v18 = vld [vmem:[%s1498_s1] ss:$0 sm:$0xff]  ;;  %s1054_s1 = smov [#allocation7]  }
  0x31   :  { %384 = vxpose.xlu0.c.b16.cont [3/8] %v912_v7, 128  ;;  %871 = vmatpush3.bf16.msk.msra.mxu1 %vm726_vm4, %v1052_v14  ;;  %vm1184_vm8 = vmpackc.low %vm89_vm7, %vm88_vm6  ;;  %v133_v26 = vpack.c.bf16 %v689_v21, %v688_v20  ;;  %vm90_vm9 = vcmp.eq.s32.totalorder %v1144_v12, %v1133_v10  ;;  %vm91_vm10 = vcmp.eq.s32.totalorder %v1147_v13, %v1133_v10  ;;  %v690_v27 = vsel %vm88_vm6, 1.0, %v1053_v16  ;;  %s658_s16 = sshll.u32 %s1054_s1, 4  ;;  %s659_s16 = int_to_ptr.vmem [resolvable:$true] %s658_s16 }
  0x32   :  { %843 = vmatpush3.bf16.msra.mxu0 %v912_v7  ;;  %872 = vmatprep.subr.msk.bf16.mxu1 %vm1156_vm5, %v1052_v14  ;;  %v691_v28 = vsel %vm89_vm7, 1.0, %v1053_v16  ;;  %vm1218_vm11 = vmpackc.low %vm91_vm10, %vm90_vm9  ;;  %v1223_v31 = vadd.s32 80, %v1116_v2  ;;  %v1226_v32 = vadd.s32 88, %v1116_v2  ;;  %vm92_vm12 = vcmp.eq.s32.totalorder %v1189_v24, %v1133_v10  ;;  %s996_s17 = scalar_lea.vmem %s659_s16, 1024  ;;  %p1001_p3 = scmp.lt.s32.totalorder %s659_s16, %s659_s16 }
  0x33   :  { %844 = vmatprep.subr.bf16.mxu0 %v913_v11  ;;  %140 = vxpose.xlu1.c.b16.start [1/8] %v132_v19, 128  ;;  %v134_v33 = vpack.c.bf16 %v691_v28, %v690_v27  ;;  %vm93_vm13 = vcmp.eq.s32.totalorder %v1192_v25, %v1133_v10  ;;  %v692_v34 = vsel %vm90_vm9, 1.0, %v1053_v16  ;;  %v693_v35 = vsel %vm91_vm10, 1.0, %v1053_v16  ;;  %p997_p2 = scmp.ne.s32.totalorder %s659_s16, %s996_s17  ;;  %p1002_p4 = scmp.lt.s32.totalorder %s996_s17, %s996_s17 }
  0x34   :  { %vm1252_vm14 = vmpackc.low %vm93_vm13, %vm92_vm12  ;;  %v1257_v38 = vadd.s32 96, %v1116_v2  ;;  %v1260_v39 = vadd.s32 104, %v1116_v2  ;;  %v135_v40 = vpack.c.bf16 %v693_v35, %v692_v34  ;;  %vm94_vm15 = vcmp.eq.s32.totalorder %v1223_v31, %v1133_v10 }
  0x35   :  { %385 = vxpose.xlu0.c.b16.cont [4/8] %v913_v11, 128  ;;  %873 = vmatpush3.bf16.msk.msra.mxu1 %vm1156_vm5, %v1052_v14  ;;  %vm95_vm0 = vcmp.eq.s32.totalorder %v1226_v32, %v1133_v10  ;;  %v694_v41 = vsel %vm92_vm12, 1.0, %v1053_v16  ;;  %v695_v42 = vsel %vm93_vm13, 1.0, %v1053_v16  ;;  %v1291_v45 = vadd.s32 112, %v1116_v2  ;;  %p1003_p5 = por %p1002_p4, %p1001_p3 }
  0x36   :  { %845 = vmatpush3.bf16.msra.mxu0 %v913_v11  ;;  %874 = vmatprep.subr.msk.bf16.mxu1 %vm1184_vm8, %v1052_v14  ;;  %vm1286_vm1 = vmpackc.low %vm95_vm0, %vm94_vm15  ;;  %v1294_v46 = vadd.s32 120, %v1116_v2  ;;  %v136_v47 = vpack.c.bf16 %v695_v42, %v694_v41  ;;  %vm96_vm2 = vcmp.eq.s32.totalorder %v1257_v38, %v1133_v10  ;;  %vm97_vm3 = vcmp.eq.s32.totalorder %v1260_v39, %v1133_v10 }
  0x37   :  { %846 = vmatprep.subr.bf16.mxu0 %v914_v22  ;;  %141 = vxpose.xlu1.c.b16.cont [2/8] %v133_v26, 128  ;;  %v696_v48 = vsel %vm94_vm15, 1.0, %v1053_v16  ;;  %v697_v49 = vsel %vm95_vm0, 1.0, %v1053_v16  ;;  %vm738_vm4 = vmpackc.low %vm97_vm3, %vm96_vm2  ;;  %vm98_vm5 = vcmp.eq.s32.totalorder %v1291_v45, %v1133_v10  ;;  %v698_v51 = vsel %vm96_vm2, 1.0, %v1053_v16  ;;  %p1004_p6 = pnand %p1003_p5, %p997_p2 }
  0x38   :  { %v137_v50 = vpack.c.bf16 %v697_v49, %v696_v48  ;;  %vm99_vm6 = vcmp.eq.s32.totalorder %v1294_v46, %v1133_v10  ;;  %v699_v52 = vsel %vm97_vm3, 1.0, %v1053_v16  ;;  %v700_v54 = vsel %vm98_vm5, 1.0, %v1053_v16 }
  0x39   :  { %386 = vxpose.xlu0.c.b16.cont [5/8] %v914_v22, 128  ;;  %875 = vmatpush3.bf16.msk.msra.mxu1 %vm1184_vm8, %v1052_v14  ;;  %vm740_vm7 = vmpackc.low %vm99_vm6, %vm98_vm5  ;;  %v138_v53 = vpack.c.bf16 %v699_v52, %v698_v51  ;;  %v701_v55 = vsel %vm99_vm6, 1.0, %v1053_v16  ;;  %vm592_vm8 = vcmp.eq.s32.totalorder %v1116_v2, %v1332_v18  ;;  %vm593_vm9 = vcmp.eq.s32.totalorder %v1119_v4, %v1332_v18 }
  0x3a   :  { %847 = vmatpush3.bf16.msra.mxu0 %v914_v22  ;;  %876 = vmatprep.subr.msk.bf16.mxu1 %vm1218_vm11, %v1052_v14  ;;  %v139_v56 = vpack.c.bf16 %v701_v55, %v700_v54  ;;  %vm594_vm10 = vcmp.eq.s32.totalorder %v1122_v5, %v1332_v18  ;;  %vm596_vm12 = vcmp.eq.s32.totalorder %v1128_v8, %v1332_v18 }
  0x3b   :  { %848 = vmatprep.subr.bf16.mxu0 %v915_v29  ;;  %142 = vxpose.xlu1.c.b16.cont [3/8] %v134_v33, 128  ;;  %vm597_vm13 = vcmp.eq.s32.totalorder %v1131_v9, %v1332_v18  ;;  %vm599_vm15 = vcmp.eq.s32.totalorder %v1147_v13, %v1332_v18  ;;  %vm600_vm0 = vcmp.eq.s32.totalorder %v1189_v24, %v1332_v18 }
  0x3c   :  { %vm602_vm2 = vcmp.eq.s32.totalorder %v1223_v31, %v1332_v18  ;;  %vm603_vm3 = vcmp.eq.s32.totalorder %v1226_v32, %v1332_v18  ;;  %vm605_vm5 = vcmp.eq.s32.totalorder %v1260_v39, %v1332_v18  ;;  %vm606_vm6 = vcmp.eq.s32.totalorder %v1291_v45, %v1332_v18 }
  0x3d   :  { %387 = vxpose.xlu0.c.b16.cont [6/8] %v915_v29, 128  ;;  %877 = vmatpush3.bf16.msk.msra.mxu1 %vm1218_vm11, %v1052_v14  ;;  %vm595_vm11 = vcmp.eq.s32.totalorder %v1125_v6, %v1332_v18 }
  0x3e   :  { %849 = vmatpush3.bf16.msra.mxu0 %v915_v29  ;;  %878 = vmatprep.subr.msk.bf16.mxu1 %vm1252_vm14, %v1052_v14 }
  0x3f   :  { %850 = vmatprep.subr.bf16.mxu0 %v916_v36  ;;  %143 = vxpose.xlu1.c.b16.cont [4/8] %v135_v40, 128 }
  0x41   :  { %388 = vxpose.xlu0.c.b16.cont [7/8] %v916_v36, 128  ;;  %879 = vmatpush3.bf16.msk.msra.mxu1 %vm1252_vm14, %v1052_v14  ;;  %vm598_vm14 = vcmp.eq.s32.totalorder %v1144_v12, %v1332_v18 }
  0x42   :  { %851 = vmatpush3.bf16.msra.mxu0 %v916_v36  ;;  %880 = vmatprep.subr.msk.bf16.mxu1 %vm1286_vm1, %v1052_v14 }
  0x43   :  { %852 = vmatprep.subr.bf16.mxu0 %v917_v43  ;;  %144 = vxpose.xlu1.c.b16.cont [5/8] %v136_v47, 128 }
  0x45   :  { %389 = vxpose.xlu0.c.b16.end [8/8] %v917_v43, 128  ;;  %881 = vmatpush3.bf16.msk.msra.mxu1 %vm1286_vm1, %v1052_v14  ;;  %vm601_vm1 = vcmp.eq.s32.totalorder %v1192_v25, %v1332_v18 }
  0x46   :  { %853 = vmatpush3.bf16.msra.mxu0 %v917_v43  ;;  %882 = vmatprep.subr.msk.bf16.mxu1 %vm738_vm4, %v1052_v14 }
  0x47   :  { %145 = vxpose.xlu1.c.b16.cont [6/8] %v137_v50, 128 }
  0x49   :  { %883 = vmatpush3.bf16.msk.msra.mxu1 %vm738_vm4, %v1052_v14  ;;  %vm604_vm4 = vcmp.eq.s32.totalorder %v1257_v38, %v1332_v18 }
  0x4a   :  { %884 = vmatprep.subr.msk.bf16.mxu1 %vm740_vm7, %v1052_v14 }
  0x4b   :  { %146 = vxpose.xlu1.c.b16.cont [7/8] %v138_v53, 128 }
  0x4d   :  { %885 = vmatpush3.bf16.msk.msra.mxu1 %vm740_vm7, %v1052_v14  ;;  %vm607_vm7 = vcmp.eq.s32.totalorder %v1294_v46, %v1332_v18 }
  0x4f   :  { %147 = vxpose.xlu1.c.b16.end [8/8] %v139_v56, 128 }
  0x8f   :  { %v390_v57 = vpop.trf.xlu0 }
  0x90   :  { %886 = vmatprep.mubr.bf16.mxu1 %v390_v57 }
  0x93   :  { %v391_v58 = vpop.trf.xlu0 }
  0x94   :  { %887 = vmatmul.mubr.bf16.vlgmr.msra.gmra.mrb[0].mxu1 %v391_v58 }
  0x97   :  { %v392_v59 = vpop.trf.xlu0 }
  0x98   :  { %890 = vmatprep.mubr.bf16.mxu1 %v392_v59 }
  0x99   :  { %v148_v61 = vpop.trf.xlu1 }
  0x9a   :  { %854 = vmatprep.mubr.bf16.mxu0 %v148_v61 }
  0x9b   :  { %v393_v60 = vpop.trf.xlu0 }
  0x9c   :  { %891 = vmatmul.mubr.bf16.gmra.mrb[4].mxu1 %v393_v60 }
  0x9d   :  { %v149_v63 = vpop.trf.xlu1 }
  0x9e   :  { %855 = vmatmul.mubr.bf16.vlgmr.msra.gmra.mrb[0].mxu0 %v149_v63 }
  0x9f   :  { %v394_v62 = vpop.trf.xlu0 }
  0xa0   :  { %894 = vmatprep.mubr.bf16.mxu1 %v394_v62 }
  0xa1   :  { %v150_v3 = vpop.trf.xlu1 }
  0xa2   :  { %858 = vmatprep.mubr.bf16.mxu0 %v150_v3 }
  0xa3   :  { %v395_v1 = vpop.trf.xlu0 }
  0xa4   :  { %895 = vmatmul.mubr.bf16.gmra.mrb[8].mxu1 %v395_v1 }
  0xa5   :  { %v151_v10 = vpop.trf.xlu1 }
  0xa6   :  { %859 = vmatmul.mubr.bf16.gmra.mrb[4].mxu0 %v151_v10 }
  0xa7   :  { %v396_v7 = vpop.trf.xlu0 }
  0xa8   :  { %898 = vmatprep.mubr.bf16.mxu1 %v396_v7 }
  0xa9   :  { %v152_v14 = vpop.trf.xlu1 }
  0xaa   :  { %862 = vmatprep.mubr.bf16.mxu0 %v152_v14 }
  0xab   :  { %v397_v11 = vpop.trf.xlu0 }
  0xac   :  { %899 = vmatmul.mubr.bf16.gmra.mrb[12].mxu1 %v397_v11 }
  0xad   :  { %v153_v15 = vpop.trf.xlu1 }
  0xae   :  { %863 = vmatmul.mubr.bf16.gmra.mrb[8].mxu0 %v153_v15 }
  0xb1   :  { %v154_v16 = vpop.trf.xlu1 }
  0xb2   :  { %866 = vmatprep.mubr.bf16.mxu0 %v154_v16 }
  0xb5   :  { %v155_v17 = vpop.trf.xlu1 }
  0xb6   :  { %867 = vmatmul.mubr.bf16.gmra.mrb[12].mxu0 %v155_v17 }
 0x167   :  { %v1334_v19 = vpop.f32.mrb[0].mxu1 }
 0x168   :  { %v1336_v20 = vpop.f32.mrb[1].mxu1  ;;  %v610_v2 = vsel %vm594_vm10, %v1334_v19, 0.0 }
 0x169   :  { %v1342_v21 = vpop.f32.mrb[2].mxu1  ;;  %v608_v23 = vsel %vm592_vm8, %v1336_v20, 0.0 }
 0x16a   :  { %v1346_v22 = vpop.f32.mrb[3].mxu1  ;;  %v611_v4 = vsel %vm595_vm11, %v1342_v21, 0.0 }
 0x16b   :  { %v609_v26 = vsel %vm593_vm9, %v1346_v22, 0.0 }
 0x16c   :  { %v624_v27 = vadd.f32 %v609_v26, %v608_v23 }
 0x16e   :  { %v625_v28 = vadd.f32 %v624_v27, %v610_v2 }
 0x16f   :  { %v1356_v29 = vpop.f32.mrb[4].mxu1 }
 0x170   :  { %v497_v5 = vmax.f32 %v1334_v19, %v1356_v29  ;;  %v1360_v30 = vpop.f32.mrb[5].mxu1  ;;  %v626_v33 = vadd.f32 %v625_v28, %v611_v4  ;;  %v614_v44 = vsel %vm598_vm14, %v1356_v29, 0.0 }
 0x171   :  { %v495_v6 = vmax.f32 %v1336_v20, %v1360_v30  ;;  %v612_v34 = vsel %vm596_vm12, %v1360_v30, 0.0  ;;  %v1367_v35 = vpop.f32.mrb[6].mxu1  ;;  %v856_v41 = vpop.f32.mrb[0].mxu0 }
 0x172   :  { %v627_v8 = vadd.f32 %v626_v33, %v612_v34  ;;  %v498_v36 = vmax.f32 %v1342_v21, %v1367_v35  ;;  %v1373_v37 = vpop.f32.mrb[7].mxu1  ;;  %v238_v43 = vpop.f32.mrb[1].mxu0  ;;  %v615_v50 = vsel %vm599_vm15, %v1367_v35, 0.0 }
 0x173   :  { %v496_v40 = vmax.f32 %v1346_v22, %v1373_v37  ;;  %v613_v9 = vsel %vm597_vm13, %v1373_v37, 0.0  ;;  %v857_v12 = vpop.f32.mrb[2].mxu0 }
 0x174   :  { %v628_v42 = vadd.f32 %v627_v8, %v613_v9  ;;  %v767_v48 = vpack.c.bf16 %v857_v12, %v856_v41  ;;  %v241_v49 = vpop.f32.mrb[3].mxu0 }
 0x175   :  { %v762_v52 = vpack.c.bf16 %v241_v49, %v238_v43 }
 0x176   :  { %v629_v47 = vadd.f32 %v628_v42, %v614_v44  ;;  %799 = vst [vmem:[#allocation7 + $0x8] sm:$0xff] %v767_v48  }
 0x177   :  { %v1384_v51 = vpop.f32.mrb[8].mxu1  ;;  %763 = vst [vmem:[#allocation7] sm:$0xff] %v762_v52  }
 0x178   :  { %v501_v53 = vmax.f32 %v497_v5, %v1384_v51  ;;  %v1387_v54 = vpop.f32.mrb[9].mxu1  ;;  %v630_v13 = vadd.f32 %v629_v47, %v615_v50  ;;  %v618_v1 = vsel %vm602_vm2, %v1384_v51, 0.0 }
 0x179   :  { %v499_v55 = vmax.f32 %v495_v6, %v1387_v54  ;;  %v616_v24 = vsel %vm600_vm0, %v1387_v54, 0.0  ;;  %v1393_v56 = vpop.f32.mrb[10].mxu1  ;;  %v860_v61 = vpop.f32.mrb[4].mxu0 }
 0x17a   :  { %v631_v57 = vadd.f32 %v630_v13, %v616_v24  ;;  %v502_v58 = vmax.f32 %v498_v36, %v1393_v56  ;;  %v1398_v59 = vpop.f32.mrb[11].mxu1  ;;  %v254_v63 = vpop.f32.mrb[5].mxu0  ;;  %v619_v11 = vsel %vm603_vm3, %v1393_v56, 0.0 }
 0x17b   :  { %v500_v60 = vmax.f32 %v496_v40, %v1398_v59  ;;  %v617_v25 = vsel %vm601_vm1, %v1398_v59, 0.0  ;;  %v861_v3 = vpop.f32.mrb[6].mxu0 }
 0x17c   :  { %v632_v62 = vadd.f32 %v631_v57, %v617_v25  ;;  %v777_v31 = vpack.c.bf16 %v861_v3, %v860_v61  ;;  %v257_v10 = vpop.f32.mrb[7].mxu0 }
 0x17d   :  { %v772_v15 = vpack.c.bf16 %v257_v10, %v254_v63 }
 0x17e   :  { %v633_v7 = vadd.f32 %v632_v62, %v618_v1  ;;  %801 = vst [vmem:[#allocation7 + $0x18] sm:$0xff] %v777_v31  }
 0x17f   :  { %v1408_v14 = vpop.f32.mrb[12].mxu1  ;;  %800 = vst [vmem:[#allocation7 + $0x10] sm:$0xff] %v772_v15  }
 0x180   :  { %v505_v16 = vmax.f32 %v501_v53, %v1408_v14  ;;  %v1411_v17 = vpop.f32.mrb[13].mxu1  ;;  %v634_v32 = vadd.f32 %v633_v7, %v619_v11  ;;  %v622_v8 = vsel %vm606_vm6, %v1408_v14, 0.0 }
 0x181   :  { %v503_v23 = vmax.f32 %v499_v55, %v1411_v17  ;;  %v620_v38 = vsel %vm604_vm4, %v1411_v17, 0.0  ;;  %v1417_v26 = vpop.f32.mrb[14].mxu1  ;;  %v864_v5 = vpop.f32.mrb[8].mxu0 }
 0x182   :  { %v635_v27 = vadd.f32 %v634_v32, %v620_v38  ;;  %v506_v2 = vmax.f32 %v502_v58, %v1417_v26  ;;  %v1422_v28 = vpop.f32.mrb[15].mxu1  ;;  %v270_v34 = vpop.f32.mrb[9].mxu0  ;;  %v623_v42 = vsel %vm607_vm7, %v1417_v26, 0.0 }
 0x183   :  { %v504_v4 = vmax.f32 %v500_v60, %v1422_v28  ;;  %v621_v39 = vsel %vm605_vm5, %v1422_v28, 0.0  ;;  %v865_v45 = vpop.f32.mrb[10].mxu0 }
 0x184   :  { %v508_v33 = vmax.f32 %v505_v16, %v506_v2  ;;  %v636_v6 = vadd.f32 %v635_v27, %v621_v39  ;;  %v787_v9 = vpack.c.bf16 %v865_v45, %v864_v5  ;;  %v273_v41 = vpop.f32.mrb[11].mxu0 }
 0x185   :  { %v507_v36 = vmax.f32 %v503_v23, %v504_v4  ;;  %v782_v44 = vpack.c.bf16 %v273_v41, %v270_v34 }
 0x186   :  { %v637_v40 = vadd.f32 %v636_v6, %v622_v8  ;;  %803 = vst [vmem:[#allocation7 + $0x28] sm:$0xff] %v787_v9  }
 0x187   :  { %v509_v43 = vmax.f32 %v507_v36, %v508_v33  ;;  %802 = vst [vmem:[#allocation7 + $0x20] sm:$0xff] %v782_v44  }
 0x188   :  { %v1430_v12 = vadd.f32 %v637_v40, %v623_v42 }
 0x189   :  { %v510_v47 = vrot.slane %v509_v43, 4  ;;  %v868_v46 = vpop.f32.mrb[12].mxu0 }
 0x18a   :  { %v286_v18 = vpop.f32.mrb[13].mxu0 }
 0x18b   :  { %v511_v48 = vmax.f32 %v509_v43, %v510_v47  ;;  %v869_v50 = vpop.f32.mrb[14].mxu0 }
 0x18c   :  { %v797_v52 = vpack.c.bf16 %v869_v50, %v868_v46  ;;  %v289_v53 = vpop.f32.mrb[15].mxu0 }
 0x18d   :  { %v512_v49 = vrot.slane %v511_v48, 2  ;;  %v792_v55 = vpack.c.bf16 %v289_v53, %v286_v18 }
 0x18e   :  { %805 = vst [vmem:[#allocation7 + $0x38] sm:$0xff] %v797_v52  }
 0x18f   :  { %v513_v13 = vmax.f32 %v511_v48, %v512_v49  ;;  %804 = vst [vmem:[#allocation7 + $0x30] sm:$0xff] %v792_v55  }
 0x191   :  { %v514_v24 = vrot.slane %v513_v13, 1 }
 0x192   :  { %1007 = shalt.err (!%p1004_p6)
}
 0x193   :  { %s1008_s20 = scalar_lea.hbm %s1500_s3, 1024 }
 0x194   :  { %p1009_p7 = scmp.ne.s32.totalorder %s1500_s3, %s1008_s20  ;;  %p1012_p8 = scmp.lt.u32.totalorder %s1008_s20, %s1500_s3 }
 0x196   :  { %p1014_p9 = pnand %p1012_p8, %p1009_p7 }
 0x198   :  { %1017 = shalt.err (!%p1014_p9)
}
 0x199   :  { %664 = dma.vmem_to_hbm [thread:$0]  %s659_s16, 1024, %s1500_s3, [#allocation4], %s1050_s0, %s1050_s0, %s1051_s12   ;;  %v1447_v57 = vmax.f32 %v513_v13, %v514_v24 }
 0x19a   :  { %s1055_s3 = smov [#allocation8]  }
 0x19b   :  { %v516_v58 = vsub.f32 %v1336_v20, %v1447_v57  ;;  %v517_v60 = vsub.f32 %v1346_v22, %v1447_v57  ;;  %v518_v25 = vsub.f32 %v1334_v19, %v1447_v57  ;;  %v519_v61 = vsub.f32 %v1342_v21, %v1447_v57  ;;  %s671_s27 = sshll.u32 %s1055_s3, 4  ;;  %s672_s27 = int_to_ptr.vmem [resolvable:$true] %s671_s27 }
 0x19c   :  { %v520_v1 = vsub.f32 %v1360_v30, %v1447_v57  ;;  %v521_v7 = vsub.f32 %v1373_v37, %v1447_v57  ;;  %v522_v22 = vsub.f32 %v1356_v29, %v1447_v57  ;;  %v523_v21 = vsub.f32 %v1367_v35, %v1447_v57  ;;  %s1018_s28 = scalar_lea.vmem %s672_s27, 16  ;;  %s1022_s29 = scalar_lea.vmem %s672_s27, 32 }
 0x19d   :  { %v532_v62 = vmul.f32 1.442695, %v516_v58  ;;  %v534_v63 = vmul.f32 1.442695, %v517_v60  ;;  %v536_v3 = vmul.f32 1.442695, %v518_v25  ;;  %v524_v30 = vsub.f32 %v1387_v54, %v1447_v57  ;;  %p1019_p10 = scmp.ne.s32.totalorder %s672_s27, %s1018_s28  ;;  %p1023_p11 = scmp.lt.s32.totalorder %s672_s27, %s672_s27 }
 0x19e   :  { %v538_v20 = vmul.f32 1.442695, %v519_v61  ;;  %v540_v19 = vmul.f32 1.442695, %v520_v1  ;;  %v542_v31 = vmul.f32 1.442695, %v521_v7  ;;  %v525_v37 = vsub.f32 %v1398_v59, %v1447_v57  ;;  %p1024_p12 = scmp.lt.s32.totalorder %s1022_s29, %s1018_s28 }
 0x19f   :  { %918 = vpow2.f32 %v532_v62  ;;  %v544_v10 = vmul.f32 1.442695, %v522_v22  ;;  %v546_v11 = vmul.f32 1.442695, %v523_v21  ;;  %v526_v29 = vsub.f32 %v1384_v51, %v1447_v57 }
 0x1a0   :  { %920 = vpow2.f32 %v534_v63  ;;  %v548_v32 = vmul.f32 1.442695, %v524_v30  ;;  %v527_v38 = vsub.f32 %v1393_v56, %v1447_v57  ;;  %v550_v54 = vmul.f32 1.442695, %v525_v37  ;;  %p1025_p13 = por %p1024_p12, %p1023_p11 }
 0x1a1   :  { %922 = vpow2.f32 %v536_v3  ;;  %v528_v59 = vsub.f32 %v1411_v17, %v1447_v57  ;;  %v552_v4 = vmul.f32 1.442695, %v526_v29  ;;  %v529_v51 = vsub.f32 %v1422_v28, %v1447_v57 }
 0x1a2   :  { %924 = vpow2.f32 %v538_v20  ;;  %v554_v33 = vmul.f32 1.442695, %v527_v38  ;;  %v530_v56 = vsub.f32 %v1408_v14, %v1447_v57  ;;  %v531_v17 = vsub.f32 %v1417_v26, %v1447_v57  ;;  %p1026_p0 = pnand %p1025_p13, %p1019_p10 }
 0x1a3   :  { %926 = vpow2.f32 %v540_v19  ;;  %v556_v8 = vmul.f32 1.442695, %v528_v59  ;;  %v558_v40 = vmul.f32 1.442695, %v529_v51  ;;  %v639_v63 = vrot.slane %v1430_v12, 4 }
 0x1a4   :  { %928 = vpow2.f32 %v542_v31  ;;  %v560_v28 = vmul.f32 1.442695, %v530_v56  ;;  %v562_v44 = vmul.f32 1.442695, %v531_v17  ;;  %v646_v30 = vand.u32 127, %v63_v0 }
 0x1a5   :  { %930 = vpow2.f32 %v544_v10  ;;  %v640_v7 = vadd.f32 %v639_v63, %v1430_v12 }
 0x1a6   :  { %932 = vpow2.f32 %v546_v11  ;;  %vm649_vm8 = vcmp.lt.s32.totalorder %v646_v30, 16 }
 0x1a7   :  { %934 = vpow2.f32 %v548_v32  ;;  %v641_v22 = vrot.slane %v640_v7, 2 }
 0x1a8   :  { %936 = vpow2.f32 %v550_v54 }
 0x1a9   :  { %v919_v15 = vpop.eup %918  ;;  %938 = vpow2.f32 %v552_v4  ;;  %v642_v19 = vadd.f32 %v641_v22, %v640_v7 }
 0x1aa   :  { %v921_v16 = vpop.eup %920  ;;  %940 = vpow2.f32 %v554_v33 }
 0x1ab   :  { %v564_v35 = vadd.f32 %v921_v16, %v919_v15  ;;  %v923_v23 = vpop.eup %922  ;;  %942 = vpow2.f32 %v556_v8  ;;  %v643_v21 = vrot.slane %v642_v19, 1 }
 0x1ac   :  { %v925_v2 = vpop.eup %924  ;;  %944 = vpow2.f32 %v558_v40 }
 0x1ad   :  { %v565_v27 = vadd.f32 %v923_v23, %v564_v35  ;;  %v927_v5 = vpop.eup %926  ;;  %946 = vpow2.f32 %v560_v28  ;;  %v644_v11 = vadd.f32 %v643_v21, %v642_v19 }
 0x1ae   :  { %v929_v34 = vpop.eup %928  ;;  %948 = vpow2.f32 %v562_v44 }
 0x1af   :  { %v566_v39 = vadd.f32 %v925_v2, %v565_v27  ;;  %v931_v45 = vpop.eup %930 }
 0x1b0   :  { %v933_v41 = vpop.eup %932 }
 0x1b1   :  { %v567_v6 = vadd.f32 %v927_v5, %v566_v39  ;;  %v935_v43 = vpop.eup %934 }
 0x1b2   :  { %v937_v48 = vpop.eup %936 }
 0x1b3   :  { %v568_v36 = vadd.f32 %v929_v34, %v567_v6  ;;  %v939_v46 = vpop.eup %938 }
 0x1b4   :  { %v941_v49 = vpop.eup %940 }
 0x1b5   :  { %v569_v9 = vadd.f32 %v931_v45, %v568_v36  ;;  %v943_v26 = vpop.eup %942 }
 0x1b6   :  { %v945_v53 = vpop.eup %944 }
 0x1b7   :  { %v570_v42 = vadd.f32 %v933_v41, %v569_v9  ;;  %v947_v55 = vpop.eup %946 }
 0x1b8   :  { %v949_v58 = vpop.eup %948 }
 0x1b9   :  { %v571_v47 = vadd.f32 %v935_v43, %v570_v42 }
 0x1bb   :  { %v572_v14 = vadd.f32 %v937_v48, %v571_v47 }
 0x1bd   :  { %v573_v18 = vadd.f32 %v939_v46, %v572_v14 }
 0x1bf   :  { %v574_v50 = vadd.f32 %v941_v49, %v573_v18 }
 0x1c1   :  { %v575_v52 = vadd.f32 %v943_v26, %v574_v50 }
 0x1c3   :  { %v576_v13 = vadd.f32 %v945_v53, %v575_v52 }
 0x1c5   :  { %v577_v24 = vadd.f32 %v947_v55, %v576_v13 }
 0x1c7   :  { %v578_v60 = vadd.f32 %v949_v58, %v577_v24 }
 0x1c9   :  { %v579_v25 = vrot.slane %v578_v60, 4 }
 0x1cb   :  { %v580_v61 = vadd.f32 %v579_v25, %v578_v60 }
 0x1cd   :  { %v581_v62 = vrot.slane %v580_v61, 2 }
 0x1cf   :  { %v582_v1 = vadd.f32 %v581_v62, %v580_v61 }
 0x1d1   :  { %v583_v3 = vrot.slane %v582_v1, 1 }
 0x1d3   :  { %v584_v20 = vadd.f32 %v583_v3, %v582_v1 }
 0x1d5   :  { %950 = vlog2.f32 %v584_v20 }
 0x1df   :  { %v951_v31 = vpop.eup %950 }
 0x1e0   :  { %v586_v10 = vmul.f32 0.6931472, %v951_v31 }
 0x1e2   :  { %v587_v37 = vadd.f32 %v586_v10, %v1447_v57 }
 0x1e4   :  { %v650_v15 = vsub.f32 %v587_v37, %v644_v11 }
 0x1e6   :  { %v651_v16 = vsel %vm649_vm8, %v650_v15, 0.0 }
 0x1e7   :  { %652 = vst [vmem:[#allocation8] sm:$0x1] %v651_v16 }
 0x1e8   :  { %1029 = shalt.err (!%p1026_p0)
}
 0x1e9   :  { %s1030_s6 = scalar_lea.hbm %s1501_s4, 16 }
 0x1ea   :  { %p1031_p1 = scmp.ne.s32.totalorder %s1501_s4, %s1030_s6  ;;  %p1034_p2 = scmp.lt.u32.totalorder %s1030_s6, %s1501_s4 }
 0x1ec   :  { %p1036_p3 = pnand %p1034_p2, %p1031_p1 }
 0x1ee   :  { %1039 = shalt.err (!%p1036_p3)
}
 0x1ef   :  { %674 = dma.vmem_to_hbm [thread:$0]  %s672_s27, 16, %s1501_s4, [#allocation9]  }
 0x1f0   :  { %1044 = dma.done.wait [#allocation4], 1024  }
 0x1f1   :  { %1045 = vsyncadd [#allocation4], 4294966272 }
 0x1f2   :  { %1046 = dma.done.wait [#allocation9], 16  }
 0x1f3   :  { %1047 = vsyncadd [#allocation9], 4294967280 }
 0x1f4   :  { %681 = vsyncpa [#allocation3], 1 }
 0x1f5   :  { %682 = vsyncpa [#allocation6], 1 }
 0x1f6   :  { %683 = vsyncpa [#allocation4], 1 }
 0x1f7   :  { %684 = vsyncpa [#allocation9], 1 }

</bundles_post_ra>
